<compile_context>
chip_gen: v5e
topology: v5e:2x2
jax: 0.10.0
libtpu: 0.0.40
codegen_flags: <defaults>
</compile_context>

<pallas_src>
import jax
import jax.numpy as jnp
from jax import lax
from jax.experimental import pallas as pl
from jax.experimental.pallas import tpu as pltpu

DROP_P = 0.3


def _round_up(x, m):
    return (x + m - 1) // m * m


# --------------------------------------------------------------------------- #
# Kernel 1:  H1 = dropout(tanh((A_hat @ X) @ W1 + b1))          (output bf16)  #
# --------------------------------------------------------------------------- #
def gcn_layer_kernel(adj_ref, x_ref, w_ref, b_ref, mask_ref, out_ref, acc_ref):
    k = pl.program_id(1)

    @pl.when(k == 0)
    def _():
        acc_ref[...] = jnp.zeros_like(acc_ref)

    # accumulate A_hat @ X over adjacency-column tiles (bf16 MXU, f32 acc)
    acc_ref[...] += jnp.dot(adj_ref[...], x_ref[...],
                            preferred_element_type=jnp.float32)

    @pl.when(k == pl.num_programs(1) - 1)
    def _():
        ax = acc_ref[...].astype(jnp.bfloat16)
        h = jnp.dot(ax, w_ref[...], preferred_element_type=jnp.float32) + b_ref[...]
        h = jnp.tanh(h) * mask_ref[...]          # keep-mask has 1/(1-p) folded in
        out_ref[...] = h.astype(out_ref.dtype)


# --------------------------------------------------------------------------- #
# Kernel 2:  OUT = (dropout(tanh((A_hat @ H1) @ W2 + b2))) @ W3 + b3   (f32)   #
# --------------------------------------------------------------------------- #
def gcn_final_kernel(adj_ref, h1_ref, w2_ref, b2_ref, mask_ref,
                     w3_ref, b3_ref, out_ref, acc_ref):
    k = pl.program_id(1)

    @pl.when(k == 0)
    def _():
        acc_ref[...] = jnp.zeros_like(acc_ref)

    acc_ref[...] += jnp.dot(adj_ref[...], h1_ref[...],
                            preferred_element_type=jnp.float32)

    @pl.when(k == pl.num_programs(1) - 1)
    def _():
        ah = acc_ref[...].astype(jnp.bfloat16)
        h2 = jnp.dot(ah, w2_ref[...], preferred_element_type=jnp.float32) + b2_ref[...]
        h2 = jnp.tanh(h2) * mask_ref[...]
        out = jnp.dot(h2.astype(jnp.bfloat16), w3_ref[...],
                      preferred_element_type=jnp.float32) + b3_ref[...]
        out_ref[...] = out.astype(out_ref.dtype)


# --------------------------------------------------------------------------- #
# Wrapper                                                                     #
# --------------------------------------------------------------------------- #
def gcn_forward(x, edge_index, params, key):
    """x: [N, F_in] float32, edge_index: [2, E] int32."""
    n, f_in = x.shape
    w1, b1, w2, b2, w3, b3 = params
    h1_dim, h2_dim, n_cls = w1.shape[1], w2.shape[1], w3.shape[1]

    # lane-dense / MXU-friendly padded sizes
    tile = 128 if n <= 128 else 256
    n_pad = _round_up(n, tile)
    f_pad = _round_up(f_in, 128)
    h1_pad = _round_up(h1_dim, 128)
    h2_pad = _round_up(h2_dim, 128)
    c_pad = _round_up(n_cls, 128)

    # ---- glue: dense symmetric-normalized adjacency (PyG GCNConv), bf16 ----
    src, dst = edge_index[0], edge_index[1]
    a = jnp.zeros((n, n), jnp.float32).at[dst, src].add(1.0)   # scatter-add (dup edges sum)
    a_hat = a + jnp.eye(n, dtype=jnp.float32)                  # self loops
    deg = jnp.sum(a_hat, axis=1)
    d_inv_sqrt = jnp.where(deg > 0, lax.rsqrt(deg), 0.0)
    adj = d_inv_sqrt[:, None] * a_hat * d_inv_sqrt[None, :]
    adj = jnp.zeros((n_pad, n_pad), jnp.bfloat16).at[:n, :n].set(
        adj.astype(jnp.bfloat16))

    xp = jnp.zeros((n_pad, f_pad), jnp.bfloat16).at[:n, :f_in].set(
        x.astype(jnp.bfloat16))

    def pad_w(w, r, c):
        return jnp.zeros((r, c), jnp.bfloat16).at[:w.shape[0], :w.shape[1]].set(
            w.astype(jnp.bfloat16))

    def pad_b(b, c):
        b = b.reshape(1, -1)
        return jnp.zeros((1, c), jnp.float32).at[:, :b.shape[1]].set(
            b.astype(jnp.float32))

    w1p, w2p, w3p = pad_w(w1, f_pad, h1_pad), pad_w(w2, h1_pad, h2_pad), pad_w(w3, h2_pad, c_pad)
    b1p, b2p, b3p = pad_b(b1, h1_pad), pad_b(b2, h2_pad), pad_b(b3, c_pad)

    # dropout keep-masks (training=True as in F.dropout default), scale folded in
    k1, k2 = jax.random.split(key)
    scale = jnp.float32(1.0 / (1.0 - DROP_P))
    m1 = jax.random.bernoulli(k1, 1.0 - DROP_P, (n_pad, h1_pad)).astype(jnp.float32) * scale
    m2 = jax.random.bernoulli(k2, 1.0 - DROP_P, (n_pad, h2_pad)).astype(jnp.float32) * scale

    grid = (n_pad // tile, n_pad // tile)
    cparams = pltpu.CompilerParams(
        dimension_semantics=("parallel", "arbitrary"),   # rows shard across v7x TCs
        vmem_limit_bytes=32 * 1024 * 1024,               # explicit budget (v7x headroom)
    )

    # ---- layer 1 -----------------------------------------------------------
    h1 = pl.pallas_call(
        gcn_layer_kernel,
        out_shape=jax.ShapeDtypeStruct((n_pad, h1_pad), jnp.bfloat16),
        grid_spec=pltpu.PrefetchScalarGridSpec(
            num_scalar_prefetch=0,
            grid=grid,
            in_specs=[
                pl.BlockSpec((tile, tile), lambda i, k: (i, k)),     # A_hat tile
                pl.BlockSpec((tile, f_pad), lambda i, k: (k, 0)),    # X col-tile rows
                pl.BlockSpec((f_pad, h1_pad), lambda i, k: (0, 0)),  # W1
                pl.BlockSpec((1, h1_pad), lambda i, k: (0, 0)),      # b1
                pl.BlockSpec((tile, h1_pad), lambda i, k: (i, 0)),   # dropout mask 1
            ],
            out_specs=pl.BlockSpec((tile, h1_pad), lambda i, k: (i, 0)),
            scratch_shapes=[pltpu.VMEM((tile, f_pad), jnp.float32)],
        ),
        compiler_params=cparams,
    )(adj, xp, w1p, b1p, m1)

    # ---- layer 2 + linear --------------------------------------------------
    out = pl.pallas_call(
        gcn_final_kernel,
        out_shape=jax.ShapeDtypeStruct((n_pad, c_pad), jnp.float32),
        grid_spec=pltpu.PrefetchScalarGridSpec(
            num_scalar_prefetch=0,
            grid=grid,
            in_specs=[
                pl.BlockSpec((tile, tile), lambda i, k: (i, k)),      # A_hat tile
                pl.BlockSpec((tile, h1_pad), lambda i, k: (k, 0)),    # H1 col-tile rows
                pl.BlockSpec((h1_pad, h2_pad), lambda i, k: (0, 0)),  # W2
                pl.BlockSpec((1, h2_pad), lambda i, k: (0, 0)),       # b2
                pl.BlockSpec((tile, h2_pad), lambda i, k: (i, 0)),    # dropout mask 2
                pl.BlockSpec((h2_pad, c_pad), lambda i, k: (0, 0)),   # W3
                pl.BlockSpec((1, c_pad), lambda i, k: (0, 0)),        # b3
            ],
            out_specs=pl.BlockSpec((tile, c_pad), lambda i, k: (i, 0)),
            scratch_shapes=[pltpu.VMEM((tile, h1_pad), jnp.float32)],
        ),
        compiler_params=cparams,
    )(adj, h1, w2p, b2p, m2, w3p, b3p)

    # slice away row / class padding
    return out[:n, :n_cls]

    # TODO(synk): for large sparse graphs, replace the dense A_hat matmul with a
    # CSR SpMM via PrefetchScalarGridSpec row offsets / column indices.


def init_params(key, f_in, num_classes):
    k1, k2, k3 = jax.random.split(key, 3)
    # GCNConv(-1, 64) lazily resolves to [f_in, 64]; GCNConv(-1, 128) -> [64, 128]
    w1 = jax.random.normal(k1, (f_in, 64), jnp.float32) * 0.1
    b1 = jnp.zeros((1, 64), jnp.float32)
    w2 = jax.random.normal(k2, (64, 128), jnp.float32) * 0.1
    b2 = jnp.zeros((1, 128), jnp.float32)
    w3 = jax.random.normal(k3, (128, num_classes), jnp.float32) * 0.1
    b3 = jnp.zeros((1, num_classes), jnp.float32)
    return (w1, b1, w2, b2, w3, b3)


if __name__ == "__main__":
    N, F_IN, NUM_CLASSES = 8, 16, 4

    key = jax.random.PRNGKey(0)
    kx, kp, kd = jax.random.split(key, 3)
    x = jax.random.normal(kx, (N, F_IN), jnp.float32)

    # ring graph, both directions (symmetric edge set)
    fwd = jnp.stack([jnp.arange(N), (jnp.arange(N) + 1) % N])
    edge_index = jnp.concatenate([fwd, fwd[::-1]], axis=1).astype(jnp.int32)

    params = init_params(kp, F_IN, NUM_CLASSES)

    out = gcn_forward(x, edge_index, params, kd)
    out = jax.block_until_ready(out)
    assert out.shape == (N, NUM_CLASSES)
    assert bool(jnp.all(jnp.isfinite(out)))
    print("KERNEL_OK")
</pallas_src>

<mosaic_0001>
module attributes {stable_mosaic.version = 11 : i64} {
  func.func @gcn_layer_kernel(%arg0: i32, %arg1: i32, %arg2: memref<128x128xbf16, #tpu.memory_space<vmem>>, %arg3: memref<128x128xbf16, #tpu.memory_space<vmem>>, %arg4: memref<128x128xbf16, #tpu.memory_space<vmem>>, %arg5: memref<1x128xf32, #tpu.memory_space<vmem>>, %arg6: memref<128x128xf32, #tpu.memory_space<vmem>>, %arg7: memref<128x128xbf16, #tpu.memory_space<vmem>>, %arg8: memref<128x128xf32, #tpu.memory_space<vmem>>) attributes {dimension_semantics = [#tpu.dimension_semantics<parallel>, #tpu.dimension_semantics<arbitrary>], iteration_bounds = array<i64: 1, 1>, scalar_prefetch = 0 : i64, scratch_operands = 1 : i64, tpu.core_type = #tpu.core_type<tc>, window_params = [{transform_indices = @transform_0, window_bounds = array<i64: 128, 128>}, {transform_indices = @transform_1, window_bounds = array<i64: 128, 128>}, {pipeline_mode = #tpu.pipeline_mode<synchronous>, transform_indices = @transform_2, window_bounds = array<i64: 128, 128>}, {pipeline_mode = #tpu.pipeline_mode<synchronous>, transform_indices = @transform_3, window_bounds = array<i64: 1, 128>}, {transform_indices = @transform_4, window_bounds = array<i64: 128, 128>}, {transform_indices = @transform_5, window_bounds = array<i64: 128, 128>}]} {
    %c0_i32 = arith.constant 0 : i32
    %0 = arith.cmpi eq, %arg1, %c0_i32 : i32
    %1 = arith.extui %0 : i1 to i32
    %c0_i32_0 = arith.constant 0 : i32
    %2 = arith.cmpi ne, %1, %c0_i32_0 : i32
    scf.if %2 {
      %cst_10 = arith.constant 0.000000e+00 : f32
      %12 = vector.broadcast %cst_10 : f32 to vector<128x128xf32>
      %c0_11 = arith.constant 0 : index
      %c0_12 = arith.constant 0 : index
      %13 = vector.load %arg8[%c0_11, %c0_12] : memref<128x128xf32, #tpu.memory_space<vmem>>, vector<128x128xf32>
      tpu.vector_store %arg8[%c0_11, %c0_12], %12 {strides = array<i32>} : memref<128x128xf32, #tpu.memory_space<vmem>>, vector<128x128xf32>,
    } else {
    }
    %c0 = arith.constant 0 : index
    %c0_1 = arith.constant 0 : index
    %3 = vector.load %arg8[%c0, %c0_1] : memref<128x128xf32, #tpu.memory_space<vmem>>, vector<128x128xf32>
    %c0_2 = arith.constant 0 : index
    %c0_3 = arith.constant 0 : index
    %4 = vector.load %arg2[%c0_2, %c0_3] : memref<128x128xbf16, #tpu.memory_space<vmem>>, vector<128x128xbf16>
    %c0_4 = arith.constant 0 : index
    %c0_5 = arith.constant 0 : index
    %5 = vector.load %arg3[%c0_4, %c0_5] : memref<128x128xbf16, #tpu.memory_space<vmem>>, vector<128x128xbf16>
    %cst = arith.constant dense<0.000000e+00> : vector<128x128xf32>
    %6 = tpu.matmul %4, %5, %cst {dimension_numbers = #tpu.dot_dimension_numbers<[1], [0], [0], [1], [0, 0, 1, 1], [], []>} : vector<128x128xbf16>, vector<128x128xbf16>, vector<128x128xf32> -> vector<128x128xf32>
    %7 = arith.addf %3, %6 : vector<128x128xf32>
    %c0_6 = arith.constant 0 : index
    %c0_7 = arith.constant 0 : index
    %8 = vector.load %arg8[%c0_6, %c0_7] : memref<128x128xf32, #tpu.memory_space<vmem>>, vector<128x128xf32>
    tpu.vector_store %arg8[%c0_6, %c0_7], %7 {strides = array<i32>} : memref<128x128xf32, #tpu.memory_space<vmem>>, vector<128x128xf32>,
    %c0_i32_8 = arith.constant 0 : i32
    %9 = arith.cmpi eq, %arg1, %c0_i32_8 : i32
    %10 = arith.extui %9 : i1 to i32
    %c0_i32_9 = arith.constant 0 : i32
    %11 = arith.cmpi ne, %10, %c0_i32_9 : i32
    scf.if %11 {
      %c0_10 = arith.constant 0 : index
      %c0_11 = arith.constant 0 : index
      %12 = vector.load %arg8[%c0_10, %c0_11] : memref<128x128xf32, #tpu.memory_space<vmem>>, vector<128x128xf32>
      %13 = arith.truncf %12 : vector<128x128xf32> to vector<128x128xbf16>
      %c0_12 = arith.constant 0 : index
      %c0_13 = arith.constant 0 : index
      %14 = vector.load %arg4[%c0_12, %c0_13] : memref<128x128xbf16, #tpu.memory_space<vmem>>, vector<128x128xbf16>
      %cst_14 = arith.constant dense<0.000000e+00> : vector<128x128xf32>
      %15 = tpu.matmul %13, %14, %cst_14 {dimension_numbers = #tpu.dot_dimension_numbers<[1], [0], [0], [1], [0, 0, 1, 1], [], []>} : vector<128x128xbf16>, vector<128x128xbf16>, vector<128x128xf32> -> vector<128x128xf32>
      %c0_15 = arith.constant 0 : index
      %c0_16 = arith.constant 0 : index
      %16 = vector.load %arg5[%c0_15, %c0_16] : memref<1x128xf32, #tpu.memory_space<vmem>>, vector<1x128xf32>
      %17 = vector.broadcast %16 : vector<1x128xf32> to vector<128x128xf32>
      %18 = arith.addf %15, %17 : vector<128x128xf32>
      %19 = math.tanh %18 : vector<128x128xf32>
      %c0_17 = arith.constant 0 : index
      %c0_18 = arith.constant 0 : index
      %20 = vector.load %arg6[%c0_17, %c0_18] : memref<128x128xf32, #tpu.memory_space<vmem>>, vector<128x128xf32>
      %21 = arith.mulf %19, %20 : vector<128x128xf32>
      %22 = arith.truncf %21 : vector<128x128xf32> to vector<128x128xbf16>
      %c0_19 = arith.constant 0 : index
      %c0_20 = arith.constant 0 : index
      %23 = vector.load %arg7[%c0_19, %c0_20] : memref<128x128xbf16, #tpu.memory_space<vmem>>, vector<128x128xbf16>
      tpu.vector_store %arg7[%c0_19, %c0_20], %22 {strides = array<i32>} : memref<128x128xbf16, #tpu.memory_space<vmem>>, vector<128x128xbf16>,
    } else {
    }
    return
  }
  func.func @transform_0(%arg0: i32, %arg1: i32) -> (i32, i32) {
    %c0_i32 = arith.constant 0 : i32
    return %arg0, %arg1 : i32, i32
  }
  func.func @transform_1(%arg0: i32, %arg1: i32) -> (i32, i32) {
    %c0_i32 = arith.constant 0 : i32
    %c0_i32_0 = arith.constant 0 : i32
    return %arg1, %c0_i32 : i32, i32
  }
  func.func @transform_2(%arg0: i32, %arg1: i32) -> (i32, i32) {
    %c0_i32 = arith.constant 0 : i32
    %c0_i32_0 = arith.constant 0 : i32
    %c0_i32_1 = arith.constant 0 : i32
    return %c0_i32, %c0_i32_0 : i32, i32
  }
  func.func @transform_3(%arg0: i32, %arg1: i32) -> (i32, i32) {
    %c0_i32 = arith.constant 0 : i32
    %c0_i32_0 = arith.constant 0 : i32
    %c0_i32_1 = arith.constant 0 : i32
    return %c0_i32, %c0_i32_0 : i32, i32
  }
  func.func @transform_4(%arg0: i32, %arg1: i32) -> (i32, i32) {
    %c0_i32 = arith.constant 0 : i32
    %c0_i32_0 = arith.constant 0 : i32
    return %arg0, %c0_i32 : i32, i32
  }
  func.func @transform_5(%arg0: i32, %arg1: i32) -> (i32, i32) {
    %c0_i32 = arith.constant 0 : i32
    %c0_i32_0 = arith.constant 0 : i32
    return %arg0, %c0_i32 : i32, i32
  }
}

</mosaic_0001>

<bundles_post_ra>
// kernel: tpu_custom_call.1
= control target key start
LH: loop header
LB: loop body
LE: loop exit
PB: predicated region body
PF: predicated region fallthrough
CT: control target
= control target key end

     0   :  { %10 = vsyncpa [#allocation4], 0  ;;  %s1014_s0 = inlined_call_operand.hbm [shape: bf16[128,128], index: 0, kind: input, shape index: {}]   ;;  %s1015_s1 = inlined_call_operand.hbm [shape: bf16[128,128], index: 1, kind: input, shape index: {}]   ;;  %s1016_s2 = inlined_call_operand.hbm [shape: bf16[128,128], index: 2, kind: input, shape index: {}]   ;;  %s1017_s3 = inlined_call_operand.vmem [shape: f32[1,128], index: 3, kind: input, shape index: {}]   ;;  %s1018_s4 = inlined_call_operand.hbm [shape: f32[128,128], index: 4, kind: input, shape index: {}]   ;;  %s1019_s5 = inlined_call_operand.hbm [shape: bf16[128,128], index: 5, kind: output, shape index: {}]  }
   0x1   :  { %11 = vsyncpa [#allocation7], 0 }
   0x2   :  { %12 = vsyncpa [#allocation10], 0 }
   0x3   :  { %13 = vsyncpa [#allocation5], 0  ;;  %s31_s20 = sshll.u32 %s1015_s1, 4  ;;  %s927_s21 = smov [#allocation6]   ;;  %s32_s20 = int_to_ptr.hbm [resolvable:$true] %s31_s20 }
   0x4   :  { %s33_s22 = sshll.u32 %s927_s21, 4  ;;  %s18_s25 = sshll.u32 %s1014_s0, 4  ;;  %s34_s22 = int_to_ptr.vmem [resolvable:$true] %s33_s22  ;;  %s19_s25 = int_to_ptr.hbm [resolvable:$true] %s18_s25 }
   0x5   :  { %s928_s26 = smov 64   ;;  %s929_s27 = smov 4  }
   0x6   :  { %39 = dma.hbm_to_vmem [thread:$0]  %s32_s20, 1024, %s34_s22, [#allocation7], %s928_s26, %s928_s26, %s929_s27  }
   0x7   :  { %s930_s28 = smov [#allocation3]   ;;  %s44_s1 = sshll.u32 %s1016_s2, 4  ;;  %s45_s1 = int_to_ptr.hbm [resolvable:$true] %s44_s1 }
   0x8   :  { %s20_s29 = sshll.u32 %s930_s28, 4  ;;  %s59_s8 = sshll.u32 %s1018_s4, 4  ;;  %s21_s29 = int_to_ptr.vmem [resolvable:$true] %s20_s29  ;;  %s60_s8 = int_to_ptr.hbm [resolvable:$true] %s59_s8 }
   0x9   :  { %26 = dma.hbm_to_vmem [thread:$0]  %s19_s25, 1024, %s21_s29, [#allocation4], %s928_s26, %s928_s26, %s929_s27  }
   0xa   :  { %s931_s9 = smov [#allocation8]   ;;  %s932_s11 = smov [#allocation9]  }
   0xb   :  { %s46_s10 = sshll.u32 %s931_s9, 4  ;;  %s61_s2 = sshll.u32 %s932_s11, 4  ;;  %s47_s10 = int_to_ptr.vmem [resolvable:$true] %s46_s10  ;;  %s62_s2 = int_to_ptr.vmem [resolvable:$true] %s61_s2 }
   0xc   :  { %52 = dma.hbm_to_vmem [thread:$0]  %s45_s1, 1024, %s47_s10, [#allocation7], %s928_s26, %s928_s26, %s929_s27  }
   0xd   :  { %s933_s12 = smov 128   ;;  %s934_s13 = smov 8  }
   0xe   :  { %67 = dma.hbm_to_vmem [thread:$0]  %s60_s8, 2048, %s62_s2, [#allocation10], %s933_s12, %s933_s12, %s934_s13  }
   0xf   :  { %919 = dma.done.wait [#allocation4], 1024  }
  0x10   :  { %920 = vsyncadd [#allocation4], 4294966272 }
  0x11   :  { %921 = dma.done.wait [#allocation7], 2048  }
  0x12   :  { %922 = vsyncadd [#allocation7], 4294965248 }
  0x13   :  { %923 = dma.done.wait [#allocation10], 2048  }
  0x14   :  { %924 = vsyncadd [#allocation10], 4294965248  ;;  %v685_v0 = vld [vmem:[#allocation6 + $0x38] sm:$0xff]  ;;  %v684_v1 = vld [vmem:[#allocation6 + $0x30] sm:$0xff]  ;;  %s559_s18 = sshll.u32 %s1019_s5, 4  ;;  %s560_s18 = int_to_ptr.hbm [resolvable:$true] %s559_s18 }
  0x15   :  { %248 = vmatpush.bf16.msra.mxu0 %v685_v0  ;;  %741 = vmatpush.bf16.msra.mxu2 %v685_v0  ;;  %v683_v2 = vld [vmem:[#allocation6 + $0x28] sm:$0xff]  ;;  %v682_v3 = vld [vmem:[#allocation6 + $0x20] sm:$0xff]  ;;  %v681_v4 = vld [vmem:[#allocation6 + $0x18] sm:$0xff] }
  0x16   :  { %v680_v5 = vld [vmem:[#allocation6 + $0x10] sm:$0xff]  ;;  %v679_v6 = vld [vmem:[#allocation6 + $0x8] sm:$0xff]  ;;  %v678_v7 = vld [vmem:[#allocation6] sm:$0xff] }
  0x17   :  { %v670_v8 = vld [vmem:[#allocation3] sm:$0xff]  ;;  %v671_v10 = vld [vmem:[#allocation3 + $0x8] sm:$0xff]  ;;  %v693_v12 = vld [vmem:[#allocation8 + $0x38] sm:$0xff] }
  0x18   :  { %v674_v9 = vld [vmem:[#allocation3 + $0x20] sm:$0xff]  ;;  %v675_v11 = vld [vmem:[#allocation3 + $0x28] sm:$0xff]  ;;  %424 = vmatpush.bf16.msra.mxu1 %v693_v12  ;;  %v692_v13 = vld [vmem:[#allocation8 + $0x30] sm:$0xff]  ;;  %749 = vmatpush.bf16.msra.mxu3 %v693_v12 }
  0x19   :  { %249 = vmatpush.bf16.msra.mxu0 %v684_v1  ;;  %742 = vmatpush.bf16.msra.mxu2 %v684_v1  ;;  %v691_v14 = vld [vmem:[#allocation8 + $0x28] sm:$0xff]  ;;  %v690_v15 = vld [vmem:[#allocation8 + $0x20] sm:$0xff]  ;;  %v672_v16 = vld [vmem:[#allocation3 + $0x10] sm:$0xff] }
  0x1a   :  { %v676_v17 = vld [vmem:[#allocation3 + $0x30] sm:$0xff]  ;;  %v689_v18 = vld [vmem:[#allocation8 + $0x18] sm:$0xff]  ;;  %v687_v22 = vld [vmem:[#allocation8 + $0x8] sm:$0xff] }
  0x1b   :  { %v673_v19 = vld [vmem:[#allocation3 + $0x18] sm:$0xff]  ;;  %v688_v21 = vld [vmem:[#allocation8 + $0x10] sm:$0xff]  ;;  %v686_v23 = vld [vmem:[#allocation8] sm:$0xff] }
  0x1c   :  { %425 = vmatpush.bf16.msra.mxu1 %v692_v13  ;;  %750 = vmatpush.bf16.msra.mxu3 %v692_v13  ;;  %v677_v20 = vld [vmem:[#allocation3 + $0x38] sm:$0xff]  ;;  %v990_v49 = vld [vmem:[%s1017_s3] ss:$0 sm:$0xff]  ;;  %v490_v56 = vld [vmem:[#allocation9 + $0x8] sm:$0xff]  ;;  %s935_s3 = smov [#allocation11]  }
  0x1d   :  { %250 = vmatpush.bf16.msra.mxu0 %v683_v2  ;;  %743 = vmatpush.bf16.msra.mxu2 %v683_v2  ;;  %v489_v55 = vld [vmem:[#allocation9] sm:$0xff]  ;;  %v491_v12 = vld [vmem:[#allocation9 + $0x10] sm:$0xff]  ;;  %v492_v13 = vld [vmem:[#allocation9 + $0x18] sm:$0xff]  ;;  %s557_s15 = sshll.u32 %s935_s3, 4  ;;  %s558_s15 = int_to_ptr.vmem [resolvable:$true] %s557_s15 }
  0x20   :  { %426 = vmatpush.bf16.msra.mxu1 %v691_v14  ;;  %751 = vmatpush.bf16.msra.mxu3 %v691_v14 }
  0x21   :  { %251 = vmatpush.bf16.msra.mxu0 %v682_v3  ;;  %744 = vmatpush.bf16.msra.mxu2 %v682_v3 }
  0x24   :  { %427 = vmatpush.bf16.msra.mxu1 %v690_v15  ;;  %752 = vmatpush.bf16.msra.mxu3 %v690_v15 }
  0x25   :  { %252 = vmatpush.bf16.msra.mxu0 %v681_v4  ;;  %745 = vmatpush.bf16.msra.mxu2 %v681_v4 }
  0x28   :  { %428 = vmatpush.bf16.msra.mxu1 %v689_v18  ;;  %753 = vmatpush.bf16.msra.mxu3 %v689_v18 }
  0x29   :  { %253 = vmatpush.bf16.msra.mxu0 %v680_v5  ;;  %746 = vmatpush.bf16.msra.mxu2 %v680_v5  ;;  %v497_v5 = vld [vmem:[#allocation9 + $0x40] sm:$0xff] }
  0x2c   :  { %429 = vmatpush.bf16.msra.mxu1 %v688_v21  ;;  %754 = vmatpush.bf16.msra.mxu3 %v688_v21 }
  0x2d   :  { %254 = vmatpush.bf16.msra.mxu0 %v679_v6  ;;  %747 = vmatpush.bf16.msra.mxu2 %v679_v6  ;;  %v498_v6 = vld [vmem:[#allocation9 + $0x48] sm:$0xff] }
  0x30   :  { %430 = vmatpush.bf16.msra.mxu1 %v687_v22  ;;  %755 = vmatpush.bf16.msra.mxu3 %v687_v22 }
  0x31   :  { %255 = vmatpush.bf16.msra.mxu0 %v678_v7  ;;  %748 = vmatpush.bf16.msra.mxu2 %v678_v7 }
  0x34   :  { %256 = vmatmul.bf16.vlgmr.msra.gmra.mxu0 %v670_v8  ;;  %276 = vmatmul.bf16.vlgmr.msra.gmra.mxu2 %v674_v9 }
  0x35   :  { %431 = vmatpush.bf16.msra.mxu1 %v686_v23  ;;  %756 = vmatpush.bf16.msra.mxu3 %v686_v23 }
  0x44   :  { %261 = vmatmul.bf16.gmra.mxu0 %v671_v10  ;;  %281 = vmatmul.bf16.gmra.mxu2 %v675_v11 }
  0x54   :  { %266 = vmatmul.bf16.gmra.mxu0 %v672_v16  ;;  %286 = vmatmul.bf16.gmra.mxu2 %v676_v17 }
  0x64   :  { %271 = vmatmul.bf16.gmra.mxu0 %v673_v19  ;;  %291 = vmatmul.bf16.gmra.mxu2 %v677_v20 }
  0xb1   :  { %v257_v24 = vpop.f32.mrf.mxu0 }
  0xb7   :  { %v277_v25 = vpop.f32.mrf.mxu2 }
  0xb9   :  { %v259_v26 = vpop.f32.mrf.mxu0 }
  0xba   :  { %v348_v27 = vpack.c.bf16 %v259_v26, %v257_v24 }
  0xbc   :  { %432 = vmatmul.bf16.vlgmr.msra.gmra.mxu1 %v348_v27  ;;  %v499_v27 = vld [vmem:[#allocation9 + $0x50] sm:$0xff] }
  0xbf   :  { %v279_v28 = vpop.f32.mrf.mxu2 }
  0xc0   :  { %v352_v29 = vpack.c.bf16 %v279_v28, %v277_v25  ;;  %v500_v28 = vld [vmem:[#allocation9 + $0x58] sm:$0xff] }
  0xc1   :  { %v262_v30 = vpop.f32.mrf.mxu0 }
  0xc2   :  { %452 = vmatmul.bf16.vlgmr.msra.gmra.mxu3 %v352_v29 }
  0xc7   :  { %v282_v31 = vpop.f32.mrf.mxu2 }
  0xc9   :  { %v264_v32 = vpop.f32.mrf.mxu0 }
  0xca   :  { %v349_v33 = vpack.c.bf16 %v264_v32, %v262_v30 }
  0xcc   :  { %437 = vmatmul.bf16.gmra.mxu1 %v349_v33 }
  0xcf   :  { %v284_v34 = vpop.f32.mrf.mxu2 }
  0xd0   :  { %v353_v35 = vpack.c.bf16 %v284_v34, %v282_v31  ;;  %v493_v34 = vld [vmem:[#allocation9 + $0x20] sm:$0xff] }
  0xd1   :  { %v267_v36 = vpop.f32.mrf.mxu0 }
  0xd2   :  { %457 = vmatmul.bf16.gmra.mxu3 %v353_v35  ;;  %v494_v35 = vld [vmem:[#allocation9 + $0x28] sm:$0xff] }
  0xd7   :  { %v287_v37 = vpop.f32.mrf.mxu2 }
  0xd9   :  { %v269_v38 = vpop.f32.mrf.mxu0 }
  0xda   :  { %v350_v39 = vpack.c.bf16 %v269_v38, %v267_v36 }
  0xdc   :  { %442 = vmatmul.bf16.gmra.mxu1 %v350_v39 }
  0xdf   :  { %v289_v40 = vpop.f32.mrf.mxu2 }
  0xe0   :  { %v354_v41 = vpack.c.bf16 %v289_v40, %v287_v37 }
  0xe1   :  { %v272_v42 = vpop.f32.mrf.mxu0 }
  0xe2   :  { %462 = vmatmul.bf16.gmra.mxu3 %v354_v41 }
  0xe7   :  { %v292_v43 = vpop.f32.mrf.mxu2 }
  0xe9   :  { %v274_v44 = vpop.f32.mrf.mxu0 }
  0xea   :  { %v351_v45 = vpack.c.bf16 %v274_v44, %v272_v42 }
  0xec   :  { %447 = vmatmul.bf16.gmra.mxu1 %v351_v45 }
  0xef   :  { %v294_v46 = vpop.f32.mrf.mxu2 }
  0xf0   :  { %v355_v47 = vpack.c.bf16 %v294_v46, %v292_v43 }
  0xf2   :  { %467 = vmatmul.bf16.gmra.mxu3 %v355_v47 }
 0x139   :  { %v433_v48 = vpop.f32.mrf.mxu1 }
 0x13a   :  { %v434_v50 = vadd.f32 %v990_v49, %v433_v48 }
 0x13c   :  { %767 = vtanh.f32 %v434_v50  ;;  %v501_v50 = vld [vmem:[#allocation9 + $0x60] sm:$0xff] }
 0x141   :  { %v435_v51 = vpop.f32.mrf.mxu1 }
 0x142   :  { %v436_v52 = vadd.f32 %v990_v49, %v435_v51  ;;  %v768_v54 = vpop.eup %767  ;;  %v502_v51 = vld [vmem:[#allocation9 + $0x68] sm:$0xff] }
 0x143   :  { %v505_v60 = vmul.f32 %v768_v54, %v489_v55 }
 0x144   :  { %769 = vtanh.f32 %v436_v52 }
 0x145   :  { %v453_v53 = vpop.f32.mrf.mxu3 }
 0x146   :  { %v454_v59 = vadd.f32 %v990_v49, %v453_v53 }
 0x148   :  { %771 = vtanh.f32 %v454_v59 }
 0x149   :  { %v438_v57 = vpop.f32.mrf.mxu1 }
 0x14a   :  { %v770_v58 = vpop.eup %769  ;;  %v439_v0 = vadd.f32 %v990_v49, %v438_v57  ;;  %v495_v57 = vld [vmem:[#allocation9 + $0x30] sm:$0xff] }
 0x14b   :  { %v506_v61 = vmul.f32 %v770_v58, %v490_v56  ;;  %v496_v58 = vld [vmem:[#allocation9 + $0x38] sm:$0xff] }
 0x14d   :  { %v697_v62 = vpack.c.bf16 %v506_v61, %v505_v60  ;;  %v455_v63 = vpop.f32.mrf.mxu3 }
 0x14e   :  { %v456_v1 = vadd.f32 %v990_v49, %v455_v63  ;;  %v772_v4 = vpop.eup %771 }
 0x14f   :  { %698 = vst [vmem:[#allocation11] sm:$0xff] %v697_v62   ;;  %v513_v9 = vmul.f32 %v772_v4, %v497_v5  ;;  %v503_v4 = vld [vmem:[#allocation9 + $0x70] sm:$0xff]  ;;  %v504_v5 = vld [vmem:[#allocation9 + $0x78] sm:$0xff] }
 0x150   :  { %773 = vtanh.f32 %v456_v1 }
 0x151   :  { %v440_v2 = vpop.f32.mrf.mxu1  ;;  %775 = vtanh.f32 %v439_v0 }
 0x152   :  { %v441_v3 = vadd.f32 %v990_v49, %v440_v2 }
 0x154   :  { %777 = vtanh.f32 %v441_v3 }
 0x155   :  { %v458_v7 = vpop.f32.mrf.mxu3 }
 0x156   :  { %v774_v8 = vpop.eup %773  ;;  %v459_v17 = vadd.f32 %v990_v49, %v458_v7 }
 0x157   :  { %v514_v10 = vmul.f32 %v774_v8, %v498_v6  ;;  %v776_v11 = vpop.eup %775 }
 0x158   :  { %v507_v18 = vmul.f32 %v776_v11, %v491_v12  ;;  %779 = vtanh.f32 %v459_v17 }
 0x159   :  { %v717_v14 = vpack.c.bf16 %v514_v10, %v513_v9  ;;  %v443_v15 = vpop.f32.mrf.mxu1 }
 0x15a   :  { %v778_v16 = vpop.eup %777  ;;  %v444_v22 = vadd.f32 %v990_v49, %v443_v15 }
 0x15b   :  { %737 = vst [vmem:[#allocation11 + $0x20] sm:$0xff] %v717_v14   ;;  %v508_v19 = vmul.f32 %v778_v16, %v492_v13 }
 0x15d   :  { %v702_v20 = vpack.c.bf16 %v508_v19, %v507_v18  ;;  %v460_v21 = vpop.f32.mrf.mxu3 }
 0x15e   :  { %v461_v23 = vadd.f32 %v990_v49, %v460_v21  ;;  %v780_v26 = vpop.eup %779 }
 0x15f   :  { %734 = vst [vmem:[#allocation11 + $0x8] sm:$0xff] %v702_v20   ;;  %v515_v31 = vmul.f32 %v780_v26, %v499_v27 }
 0x160   :  { %781 = vtanh.f32 %v461_v23 }
 0x161   :  { %v445_v24 = vpop.f32.mrf.mxu1  ;;  %783 = vtanh.f32 %v444_v22 }
 0x162   :  { %v446_v25 = vadd.f32 %v990_v49, %v445_v24 }
 0x164   :  { %785 = vtanh.f32 %v446_v25 }
 0x165   :  { %v463_v29 = vpop.f32.mrf.mxu3 }
 0x166   :  { %v782_v30 = vpop.eup %781  ;;  %v464_v39 = vadd.f32 %v990_v49, %v463_v29 }
 0x167   :  { %v516_v32 = vmul.f32 %v782_v30, %v500_v28  ;;  %v784_v33 = vpop.eup %783 }
 0x168   :  { %v509_v40 = vmul.f32 %v784_v33, %v493_v34  ;;  %787 = vtanh.f32 %v464_v39 }
 0x169   :  { %v722_v36 = vpack.c.bf16 %v516_v32, %v515_v31  ;;  %v448_v37 = vpop.f32.mrf.mxu1 }
 0x16a   :  { %v786_v38 = vpop.eup %785  ;;  %v449_v44 = vadd.f32 %v990_v49, %v448_v37 }
 0x16b   :  { %738 = vst [vmem:[#allocation11 + $0x28] sm:$0xff] %v722_v36   ;;  %v510_v41 = vmul.f32 %v786_v38, %v494_v35 }
 0x16d   :  { %v707_v42 = vpack.c.bf16 %v510_v41, %v509_v40  ;;  %v465_v43 = vpop.f32.mrf.mxu3 }
 0x16e   :  { %v466_v45 = vadd.f32 %v990_v49, %v465_v43  ;;  %v788_v48 = vpop.eup %787 }
 0x16f   :  { %735 = vst [vmem:[#allocation11 + $0x10] sm:$0xff] %v707_v42   ;;  %v517_v54 = vmul.f32 %v788_v48, %v501_v50 }
 0x170   :  { %789 = vtanh.f32 %v466_v45 }
 0x171   :  { %v450_v46 = vpop.f32.mrf.mxu1  ;;  %791 = vtanh.f32 %v449_v44 }
 0x172   :  { %v451_v47 = vadd.f32 %v990_v49, %v450_v46 }
 0x174   :  { %793 = vtanh.f32 %v451_v47 }
 0x175   :  { %v468_v52 = vpop.f32.mrf.mxu3 }
 0x176   :  { %v790_v53 = vpop.eup %789  ;;  %v469_v61 = vadd.f32 %v990_v49, %v468_v52 }
 0x177   :  { %v518_v55 = vmul.f32 %v790_v53, %v502_v51  ;;  %v792_v56 = vpop.eup %791 }
 0x178   :  { %v511_v62 = vmul.f32 %v792_v56, %v495_v57  ;;  %795 = vtanh.f32 %v469_v61 }
 0x179   :  { %v727_v59 = vpack.c.bf16 %v518_v55, %v517_v54 }
 0x17a   :  { %v794_v60 = vpop.eup %793 }
 0x17b   :  { %739 = vst [vmem:[#allocation11 + $0x30] sm:$0xff] %v727_v59   ;;  %v512_v63 = vmul.f32 %v794_v60, %v496_v58 }
 0x17d   :  { %v712_v0 = vpack.c.bf16 %v512_v63, %v511_v62  ;;  %v470_v1 = vpop.f32.mrf.mxu3 }
 0x17e   :  { %v471_v2 = vadd.f32 %v990_v49, %v470_v1  ;;  %v796_v3 = vpop.eup %795 }
 0x17f   :  { %736 = vst [vmem:[#allocation11 + $0x18] sm:$0xff] %v712_v0   ;;  %v519_v7 = vmul.f32 %v796_v3, %v503_v4 }
 0x180   :  { %797 = vtanh.f32 %v471_v2 }
 0x186   :  { %v798_v6 = vpop.eup %797 }
 0x187   :  { %v520_v8 = vmul.f32 %v798_v6, %v504_v5 }
 0x189   :  { %v732_v9 = vpack.c.bf16 %v520_v8, %v519_v7 }
 0x18b   :  { %740 = vst [vmem:[#allocation11 + $0x38] sm:$0xff] %v732_v9  }
 0x18c   :  { %565 = dma.vmem_to_hbm [thread:$0]  %s558_s15, 1024, %s560_s18, [#allocation5], %s928_s26, %s928_s26, %s929_s27  }
 0x18d   :  { %925 = dma.done.wait [#allocation5], 1024  }
 0x18e   :  { %926 = vsyncadd [#allocation5], 4294966272 }
 0x18f   :  { %570 = vsyncpa [#allocation4], 1 }
 0x190   :  { %571 = vsyncpa [#allocation7], 1 }
 0x191   :  { %572 = vsyncpa [#allocation10], 1 }
 0x192   :  { %573 = vsyncpa [#allocation5], 1 }

</bundles_post_ra>
